<compile_context>
chip_gen: v5e
topology: v5e:2x2
jax: 0.10.0
libtpu: 0.0.40
codegen_flags: <defaults>
</compile_context>

<pallas_src>
import functools

import jax
import jax.numpy as jnp
from jax import lax
from jax.experimental import pallas as pl
from jax.experimental.pallas import tpu as pltpu


def _round_up(x, m):
    return (x + m - 1) // m * m


def _mlp_kernel(emb_ref, w1_ref, b1_ref, w2_ref, b2_ref, y_ref,
                logits_ref, loss_ref, *, batch, tile_b, classes):
    # emb_ref:    (TB, L, D) bf16      w1_ref: (D, HP) f32 (pre-scaled by 1/L)
    # b1_ref:     (1, HP)              w2_ref: (HP, CP)     b2_ref: (1, CP)
    # y_ref:      (TB, 1) int32
    # logits_ref: (TB, CP) f32         loss_ref: (1, 1) f32 accumulator
    pid = pl.program_id(0)

    @pl.when(pid == 0)
    def _init():
        loss_ref[...] = jnp.zeros_like(loss_ref)

    # Cast bf16 -> f32 (cheap; hidden under the next tile's DMA), then pool.
    emb = emb_ref[...].astype(jnp.float32)          # (TB, L, D)
    pooled = jnp.sum(emb, axis=1)                   # (TB, D); mean's 1/L folded into w1

    h = jnp.dot(pooled, w1_ref[...],
                preferred_element_type=jnp.float32) + b1_ref[...]   # (TB, HP)
    h = jnp.maximum(h, 0.0)                                          # ReLU

    logits = jnp.dot(h, w2_ref[...],
                     preferred_element_type=jnp.float32) + b2_ref[...]  # (TB, CP)
    logits_ref[...] = logits                        # lane-dense (TB, 128) store

    # --- mean CrossEntropyLoss, accumulated across batch tiles ---
    tb, cp = logits.shape
    cls = lax.broadcasted_iota(jnp.int32, (tb, cp), 1)
    lane_valid = cls < classes
    masked = jnp.where(lane_valid, logits, -1e30)   # ignore padded class lanes

    m = jnp.max(masked, axis=-1, keepdims=True)                          # (TB, 1)
    lse = m + jnp.log(jnp.sum(jnp.exp(masked - m), axis=-1, keepdims=True))
    onehot = (cls == y_ref[...]).astype(jnp.float32)                     # (TB, CP)
    true_logit = jnp.sum(logits * onehot, axis=-1, keepdims=True)        # (TB, 1)
    per_example = lse - true_logit                                       # (TB, 1)

    row_ids = pid * tile_b + lax.broadcasted_iota(jnp.int32, (tb, 1), 0)
    row_valid = (row_ids < batch).astype(jnp.float32)    # mask padded batch rows
    loss_ref[...] += jnp.sum(per_example * row_valid, axis=0, keepdims=True)

    @pl.when(pid == pl.num_programs(0) - 1)
    def _finalize():
        loss_ref[...] = loss_ref[...] * (1.0 / batch)


def mlp_forward(x, y, params, mode='train', tile_b=128):
    emb_table, w1, b1, w2, b2 = params
    B, L = x.shape
    D, H = w1.shape
    C = w2.shape[1]

    # Sublane/lane-friendly padded sizes.
    TB = min(tile_b, _round_up(B, 8))      # batch tile: multiple of 8 sublanes
    B_pad = _round_up(B, TB)
    HP = _round_up(H, 128)                 # hidden padded to lane width
    CP = _round_up(C, 128)                 # classes padded to lane width

    # Embedding gather stays as plain-JAX glue (bf16 table halves HBM bytes).
    # TODO(synk): fuse the gather into the kernel (scalar-prefetched token ids
    # + manual DMA) to remove the (B, L, D) HBM round trip entirely.
    emb = emb_table[x]                                   # (B, L, D) bf16
    if B_pad != B:
        emb = jnp.pad(emb, ((0, B_pad - B), (0, 0), (0, 0)))
        y = jnp.pad(y, (0, B_pad - B))
    y_2d = y.reshape(B_pad, 1).astype(jnp.int32)

    # Zero-padded, pre-transposed weights; fold the sequence-mean 1/L into w1.
    w1p = jnp.zeros((D, HP), jnp.float32).at[:, :H].set(
        w1.astype(jnp.float32) * (1.0 / L))
    b1p = jnp.zeros((1, HP), jnp.float32).at[:, :H].set(b1.astype(jnp.float32))
    w2p = jnp.zeros((HP, CP), jnp.float32).at[:H, :C].set(w2.astype(jnp.float32))
    b2p = jnp.zeros((1, CP), jnp.float32).at[:, :C].set(b2.astype(jnp.float32))

    grid = (B_pad // TB,)

    # VMEM budget: double-buffered emb/logits tiles + resident weights + slack.
    emb_tile_bytes = TB * L * D * emb.dtype.itemsize
    out_tile_bytes = TB * CP * 4
    weight_bytes = (D * HP + HP + HP * CP + CP) * 4
    vmem_limit = int(min(32 << 20,
                         max(16 << 20,
                             4 * emb_tile_bytes + 4 * out_tile_bytes
                             + weight_bytes + (4 << 20))))

    kernel = functools.partial(_mlp_kernel, batch=B, tile_b=TB, classes=C)

    logits_pad, loss = pl.pallas_call(
        kernel,
        out_shape=(jax.ShapeDtypeStruct((B_pad, CP), jnp.float32),
                   jax.ShapeDtypeStruct((1, 1), jnp.float32)),
        grid=grid,
        in_specs=[
            pl.BlockSpec((TB, L, D), lambda i: (i, 0, 0)),   # streamed, double-buffered
            pl.BlockSpec((D, HP),    lambda i: (0, 0)),      # weights stay VMEM-resident
            pl.BlockSpec((1, HP),    lambda i: (0, 0)),
            pl.BlockSpec((HP, CP),   lambda i: (0, 0)),
            pl.BlockSpec((1, CP),    lambda i: (0, 0)),
            pl.BlockSpec((TB, 1),    lambda i: (i, 0)),
        ],
        out_specs=(
            pl.BlockSpec((TB, CP), lambda i: (i, 0)),        # lane-dense logits
            pl.BlockSpec((1, 1),   lambda i: (0, 0)),        # resident loss accumulator
        ),
        compiler_params=pltpu.CompilerParams(
            dimension_semantics=("arbitrary",),              # loss carries state across tiles
            vmem_limit_bytes=vmem_limit),
    )(emb, w1p, b1p, w2p, b2p, y_2d)

    if mode == 'train':
        return loss[0, 0]
    return logits_pad[:B, :C]


def init_params(key, vocab=100000, dim=64, hidden=16, classes=2):
    k0, k1, k2, k3, k4 = jax.random.split(key, 5)
    # bf16 embedding table: halves the HBM bytes of the gather + kernel input.
    emb_table = (jax.random.normal(k0, (vocab, dim), jnp.float32) * 0.02
                 ).astype(jnp.bfloat16)
    # Linear weights stored pre-transposed (in, out) for the kernel's x @ W.
    w1 = jax.random.normal(k1, (dim, hidden), jnp.float32) * 0.1
    b1 = jax.random.normal(k2, (hidden,), jnp.float32) * 0.01
    w2 = jax.random.normal(k3, (hidden, classes), jnp.float32) * 0.1
    b2 = jax.random.normal(k4, (classes,), jnp.float32) * 0.01
    return (emb_table, w1, b1, w2, b2)


if __name__ == "__main__":
    key = jax.random.PRNGKey(0)
    params = init_params(key, vocab=100000, dim=64, hidden=16, classes=2)

    B, L = 2, 8
    kx, ky = jax.random.split(jax.random.PRNGKey(0))
    x = jax.random.randint(kx, (B, L), 0, 100000, dtype=jnp.int32)
    y = jax.random.randint(ky, (B,), 0, 2, dtype=jnp.int32)

    loss = mlp_forward(x, y, params, mode='train')
    logits = mlp_forward(x, y, params, mode='eval')
    jax.block_until_ready(loss)
    jax.block_until_ready(logits)

    assert logits.shape == (B, 2)
    assert loss.shape == ()
    assert bool(jnp.isfinite(loss))
    print("KERNEL_OK")
</pallas_src>

<mosaic_0001>
module attributes {stable_mosaic.version = 11 : i64} {
  func.func @_mlp_kernel(%arg0: i32, %arg1: memref<8x8x64xbf16, #tpu.memory_space<vmem>>, %arg2: memref<64x128xf32, #tpu.memory_space<vmem>>, %arg3: memref<1x128xf32, #tpu.memory_space<vmem>>, %arg4: memref<128x128xf32, #tpu.memory_space<vmem>>, %arg5: memref<1x128xf32, #tpu.memory_space<vmem>>, %arg6: memref<8x1xi32, #tpu.memory_space<vmem>>, %arg7: memref<8x128xf32, #tpu.memory_space<vmem>>, %arg8: memref<1x1xf32, #tpu.memory_space<vmem>>) attributes {dimension_semantics = [#tpu.dimension_semantics<arbitrary>], iteration_bounds = array<i64: 1>, scalar_prefetch = 0 : i64, scratch_operands = 0 : i64, tpu.core_type = #tpu.core_type<tc>, window_params = [{transform_indices = @transform_0, window_bounds = array<i64: 8, 8, 64>}, {pipeline_mode = #tpu.pipeline_mode<synchronous>, transform_indices = @transform_1, window_bounds = array<i64: 64, 128>}, {pipeline_mode = #tpu.pipeline_mode<synchronous>, transform_indices = @transform_2, window_bounds = array<i64: 1, 128>}, {pipeline_mode = #tpu.pipeline_mode<synchronous>, transform_indices = @transform_3, window_bounds = array<i64: 128, 128>}, {pipeline_mode = #tpu.pipeline_mode<synchronous>, transform_indices = @transform_4, window_bounds = array<i64: 1, 128>}, {transform_indices = @transform_5, window_bounds = array<i64: 8, 1>}, {transform_indices = @transform_6, window_bounds = array<i64: 8, 128>}, {pipeline_mode = #tpu.pipeline_mode<synchronous>, transform_indices = @transform_7, window_bounds = array<i64: 1, 1>}]} {
    %c0_i32 = arith.constant 0 : i32
    %0 = arith.cmpi eq, %arg0, %c0_i32 : i32
    %1 = arith.extui %0 : i1 to i32
    %c0_i32_0 = arith.constant 0 : i32
    %2 = arith.cmpi ne, %1, %c0_i32_0 : i32
    scf.if %2 {
      %cst_30 = arith.constant 0.000000e+00 : f32
      %59 = vector.broadcast %cst_30 : f32 to vector<1x1xf32>
      %c0_31 = arith.constant 0 : index
      %c0_32 = arith.constant 0 : index
      %60 = vector.load %arg8[%c0_31, %c0_32] : memref<1x1xf32, #tpu.memory_space<vmem>>, vector<1x1xf32>
      tpu.vector_store %arg8[%c0_31, %c0_32], %59 {strides = array<i32>} : memref<1x1xf32, #tpu.memory_space<vmem>>, vector<1x1xf32>,
    } else {
    }
    %c0 = arith.constant 0 : index
    %c0_1 = arith.constant 0 : index
    %c0_2 = arith.constant 0 : index
    %3 = vector.load %arg1[%c0, %c0_1, %c0_2] : memref<8x8x64xbf16, #tpu.memory_space<vmem>>, vector<8x8x64xbf16>
    %4 = arith.extf %3 : vector<8x8x64xbf16> to vector<8x8x64xf32>
    %cst = arith.constant dense<0.000000e+00> : vector<8x64xf32>
    %5 = vector.multi_reduction <add>, %4, %cst [1] : vector<8x8x64xf32> to vector<8x64xf32>
    %c0_3 = arith.constant 0 : index
    %c0_4 = arith.constant 0 : index
    %6 = vector.load %arg2[%c0_3, %c0_4] : memref<64x128xf32, #tpu.memory_space<vmem>>, vector<64x128xf32>
    %cst_5 = arith.constant dense<0.000000e+00> : vector<8x128xf32>
    %7 = tpu.matmul %5, %6, %cst_5 {dimension_numbers = #tpu.dot_dimension_numbers<[1], [0], [0], [1], [0, 0, 1, 1], [], []>} : vector<8x64xf32>, vector<64x128xf32>, vector<8x128xf32> -> vector<8x128xf32>
    %c0_6 = arith.constant 0 : index
    %c0_7 = arith.constant 0 : index
    %8 = vector.load %arg3[%c0_6, %c0_7] : memref<1x128xf32, #tpu.memory_space<vmem>>, vector<1x128xf32>
    %9 = vector.broadcast %8 : vector<1x128xf32> to vector<8x128xf32>
    %10 = arith.addf %7, %9 : vector<8x128xf32>
    %cst_8 = arith.constant 0.000000e+00 : f32
    %11 = vector.broadcast %cst_8 : f32 to vector<8x128xf32>
    %12 = arith.maximumf %10, %11 : vector<8x128xf32>
    %c0_9 = arith.constant 0 : index
    %c0_10 = arith.constant 0 : index
    %13 = vector.load %arg4[%c0_9, %c0_10] : memref<128x128xf32, #tpu.memory_space<vmem>>, vector<128x128xf32>
    %cst_11 = arith.constant dense<0.000000e+00> : vector<8x128xf32>
    %14 = tpu.matmul %12, %13, %cst_11 {dimension_numbers = #tpu.dot_dimension_numbers<[1], [0], [0], [1], [0, 0, 1, 1], [], []>} : vector<8x128xf32>, vector<128x128xf32>, vector<8x128xf32> -> vector<8x128xf32>
    %c0_12 = arith.constant 0 : index
    %c0_13 = arith.constant 0 : index
    %15 = vector.load %arg5[%c0_12, %c0_13] : memref<1x128xf32, #tpu.memory_space<vmem>>, vector<1x128xf32>
    %16 = vector.broadcast %15 : vector<1x128xf32> to vector<8x128xf32>
    %17 = arith.addf %14, %16 : vector<8x128xf32>
    %c0_14 = arith.constant 0 : index
    %c0_15 = arith.constant 0 : index
    %18 = vector.load %arg7[%c0_14, %c0_15] : memref<8x128xf32, #tpu.memory_space<vmem>>, vector<8x128xf32>
    tpu.vector_store %arg7[%c0_14, %c0_15], %17 {strides = array<i32>} : memref<8x128xf32, #tpu.memory_space<vmem>>, vector<8x128xf32>,
    %19 = tpu.iota {dimensions = array<i32: 1>} : vector<8x128xi32>
    %c2_i32 = arith.constant 2 : i32
    %20 = vector.broadcast %c2_i32 : i32 to vector<8x128xi32>
    %21 = arith.cmpi slt, %19, %20 : vector<8x128xi32>
    %cst_16 = arith.constant -1.000000e+30 : f32
    %22 = vector.broadcast %cst_16 : f32 to vector<8x128xf32>
    %23 = arith.select %21, %17, %22 : vector<8x128xi1>, vector<8x128xf32>
    %cst_17 = arith.constant dense<0xFF800000> : vector<8xf32>
    %24 = vector.multi_reduction <maximumf>, %23, %cst_17 [1] : vector<8x128xf32> to vector<8xf32>
    %25 = vector.shape_cast %24 : vector<8xf32> to vector<8x1xf32>
    %26 = vector.broadcast %25 : vector<8x1xf32> to vector<8x128xf32>
    %27 = arith.subf %23, %26 : vector<8x128xf32>
    %28 = math.exp %27 : vector<8x128xf32>
    %cst_18 = arith.constant dense<0.000000e+00> : vector<8xf32>
    %29 = vector.multi_reduction <add>, %28, %cst_18 [1] : vector<8x128xf32> to vector<8xf32>
    %30 = vector.shape_cast %29 : vector<8xf32> to vector<8x1xf32>
    %31 = math.log %30 : vector<8x1xf32>
    %32 = arith.addf %25, %31 : vector<8x1xf32>
    %c0_19 = arith.constant 0 : index
    %c0_20 = arith.constant 0 : index
    %33 = vector.load %arg6[%c0_19, %c0_20] : memref<8x1xi32, #tpu.memory_space<vmem>>, vector<8x1xi32>
    %34 = vector.broadcast %33 : vector<8x1xi32> to vector<8x128xi32>
    %35 = arith.cmpi eq, %19, %34 : vector<8x128xi32>
    %36 = arith.extui %35 : vector<8x128xi1> to vector<8x128xi32>
    %37 = arith.sitofp %36 : vector<8x128xi32> to vector<8x128xf32>
    %38 = arith.mulf %17, %37 : vector<8x128xf32>
    %cst_21 = arith.constant dense<0.000000e+00> : vector<8xf32>
    %39 = vector.multi_reduction <add>, %38, %cst_21 [1] : vector<8x128xf32> to vector<8xf32>
    %40 = vector.shape_cast %39 : vector<8xf32> to vector<8x1xf32>
    %41 = arith.subf %32, %40 : vector<8x1xf32>
    %c8_i32 = arith.constant 8 : i32
    %42 = arith.muli %arg0, %c8_i32 : i32
    %43 = tpu.iota {dimensions = array<i32: 0>} : vector<8x1xi32>
    %44 = vector.broadcast %42 : i32 to vector<8x1xi32>
    %45 = arith.addi %44, %43 : vector<8x1xi32>
    %c2_i32_22 = arith.constant 2 : i32
    %46 = vector.broadcast %c2_i32_22 : i32 to vector<8x1xi32>
    %47 = arith.cmpi slt, %45, %46 : vector<8x1xi32>
    %48 = arith.extui %47 : vector<8x1xi1> to vector<8x1xi32>
    %49 = arith.sitofp %48 : vector<8x1xi32> to vector<8x1xf32>
    %c0_23 = arith.constant 0 : index
    %c0_24 = arith.constant 0 : index
    %50 = vector.load %arg8[%c0_23, %c0_24] : memref<1x1xf32, #tpu.memory_space<vmem>>, vector<1x1xf32>
    %51 = arith.mulf %41, %49 : vector<8x1xf32>
    %cst_25 = arith.constant dense<0.000000e+00> : vector<1xf32>
    %52 = vector.multi_reduction <add>, %51, %cst_25 [0] : vector<8x1xf32> to vector<1xf32>
    %53 = vector.shape_cast %52 : vector<1xf32> to vector<1x1xf32>
    %54 = arith.addf %50, %53 : vector<1x1xf32>
    %c0_26 = arith.constant 0 : index
    %c0_27 = arith.constant 0 : index
    %55 = vector.load %arg8[%c0_26, %c0_27] : memref<1x1xf32, #tpu.memory_space<vmem>>, vector<1x1xf32>
    tpu.vector_store %arg8[%c0_26, %c0_27], %54 {strides = array<i32>} : memref<1x1xf32, #tpu.memory_space<vmem>>, vector<1x1xf32>,
    %c0_i32_28 = arith.constant 0 : i32
    %56 = arith.cmpi eq, %arg0, %c0_i32_28 : i32
    %57 = arith.extui %56 : i1 to i32
    %c0_i32_29 = arith.constant 0 : i32
    %58 = arith.cmpi ne, %57, %c0_i32_29 : i32
    scf.if %58 {
      %c0_30 = arith.constant 0 : index
      %c0_31 = arith.constant 0 : index
      %59 = vector.load %arg8[%c0_30, %c0_31] : memref<1x1xf32, #tpu.memory_space<vmem>>, vector<1x1xf32>
      %cst_32 = arith.constant 5.000000e-01 : f32
      %60 = vector.broadcast %cst_32 : f32 to vector<1x1xf32>
      %61 = arith.mulf %59, %60 : vector<1x1xf32>
      %c0_33 = arith.constant 0 : index
      %c0_34 = arith.constant 0 : index
      %62 = vector.load %arg8[%c0_33, %c0_34] : memref<1x1xf32, #tpu.memory_space<vmem>>, vector<1x1xf32>
      tpu.vector_store %arg8[%c0_33, %c0_34], %61 {strides = array<i32>} : memref<1x1xf32, #tpu.memory_space<vmem>>, vector<1x1xf32>,
    } else {
    }
    return
  }
  func.func @transform_0(%arg0: i32) -> (i32, i32, i32) {
    %c0_i32 = arith.constant 0 : i32
    %c0_i32_0 = arith.constant 0 : i32
    %c0_i32_1 = arith.constant 0 : i32
    return %arg0, %c0_i32, %c0_i32_0 : i32, i32, i32
  }
  func.func @transform_1(%arg0: i32) -> (i32, i32) {
    %c0_i32 = arith.constant 0 : i32
    %c0_i32_0 = arith.constant 0 : i32
    %c0_i32_1 = arith.constant 0 : i32
    return %c0_i32, %c0_i32_0 : i32, i32
  }
  func.func @transform_2(%arg0: i32) -> (i32, i32) {
    %c0_i32 = arith.constant 0 : i32
    %c0_i32_0 = arith.constant 0 : i32
    %c0_i32_1 = arith.constant 0 : i32
    return %c0_i32, %c0_i32_0 : i32, i32
  }
  func.func @transform_3(%arg0: i32) -> (i32, i32) {
    %c0_i32 = arith.constant 0 : i32
    %c0_i32_0 = arith.constant 0 : i32
    %c0_i32_1 = arith.constant 0 : i32
    return %c0_i32, %c0_i32_0 : i32, i32
  }
  func.func @transform_4(%arg0: i32) -> (i32, i32) {
    %c0_i32 = arith.constant 0 : i32
    %c0_i32_0 = arith.constant 0 : i32
    %c0_i32_1 = arith.constant 0 : i32
    return %c0_i32, %c0_i32_0 : i32, i32
  }
  func.func @transform_5(%arg0: i32) -> (i32, i32) {
    %c0_i32 = arith.constant 0 : i32
    %c0_i32_0 = arith.constant 0 : i32
    return %arg0, %c0_i32 : i32, i32
  }
  func.func @transform_6(%arg0: i32) -> (i32, i32) {
    %c0_i32 = arith.constant 0 : i32
    %c0_i32_0 = arith.constant 0 : i32
    return %arg0, %c0_i32 : i32, i32
  }
  func.func @transform_7(%arg0: i32) -> (i32, i32) {
    %c0_i32 = arith.constant 0 : i32
    %c0_i32_0 = arith.constant 0 : i32
    %c0_i32_1 = arith.constant 0 : i32
    return %c0_i32, %c0_i32_0 : i32, i32
  }
}

</mosaic_0001>

<bundles_post_ra>
// kernel: tpu_custom_call.1
= control target key start
LH: loop header
LB: loop body
LE: loop exit
PB: predicated region body
PF: predicated region fallthrough
CT: control target
= control target key end

     0   :  { %13 = vsyncpa [#allocation3], 0  ;;  %s593_s0 = inlined_call_operand.hbm [shape: bf16[8,8,64], index: 0, kind: input, shape index: {}]   ;;  %s594_s1 = inlined_call_operand.hbm [shape: f32[64,128], index: 1, kind: input, shape index: {}]   ;;  %s595_s2 = inlined_call_operand.vmem [shape: f32[1,128], index: 2, kind: input, shape index: {}]   ;;  %s596_s3 = inlined_call_operand.hbm [shape: f32[128,128], index: 3, kind: input, shape index: {}]   ;;  %s597_s4 = inlined_call_operand.vmem [shape: f32[1,128], index: 4, kind: input, shape index: {}]   ;;  %s598_s5 = inlined_call_operand.vmem [shape: s32[8,1], index: 5, kind: input, shape index: {}]   ;;  %s599_s6 = inlined_call_operand.hbm [shape: f32[8,128], index: 6, kind: output, shape index: {0}]   ;;  %s600_s7 = inlined_call_operand.hbm [shape: f32[1,1], index: 7, kind: output, shape index: {1}]  }
   0x1   :  { %14 = vsyncpa [#allocation6], 0 }
   0x2   :  { %15 = vsyncpa [#allocation4], 0  ;;  %s34_s26 = sshll.u32 %s594_s1, 4  ;;  %s35_s26 = int_to_ptr.hbm [resolvable:$true] %s34_s26 }
   0x3   :  { %16 = vsyncpa [#allocation10], 0  ;;  %s503_s27 = smov [#allocation5]   ;;  %s21_s8 = sshll.u32 %s593_s0, 4  ;;  %s22_s8 = int_to_ptr.hbm [resolvable:$true] %s21_s8 }
   0x4   :  { %s36_s28 = sshll.u32 %s503_s27, 4  ;;  %s504_s9 = smov 128   ;;  %s37_s28 = int_to_ptr.vmem [resolvable:$true] %s36_s28 }
   0x5   :  { %s505_s10 = smov 8   ;;  %s506_s11 = smov [#allocation2]  }
   0x6   :  { %42 = dma.hbm_to_vmem [thread:$0]  %s35_s26, 1024, %s37_s28, [#allocation6], %s504_s9, %s504_s9, %s505_s10  }
   0x7   :  { %s23_s12 = sshll.u32 %s506_s11, 4  ;;  %s507_s13 = smov 64   ;;  %s24_s12 = int_to_ptr.vmem [resolvable:$true] %s23_s12 }
   0x8   :  { %s508_s14 = smov 4   ;;  %s49_s16 = sshll.u32 %s596_s3, 4  ;;  %s50_s16 = int_to_ptr.hbm [resolvable:$true] %s49_s16 }
   0x9   :  { %29 = dma.hbm_to_vmem [thread:$0]  %s22_s8, 512, %s24_s12, [#allocation3], %s507_s13, %s507_s13, %s508_s14  }
   0xa   :  { %s509_s17 = smov [#allocation7]  }
   0xb   :  { %s51_s18 = sshll.u32 %s509_s17, 4  ;;  %s52_s18 = int_to_ptr.vmem [resolvable:$true] %s51_s18 }
   0xc   :  { %57 = dma.hbm_to_vmem [thread:$0]  %s50_s16, 2048, %s52_s18, [#allocation6], %s504_s9, %s504_s9, %s505_s10  }
   0xd   :  { %495 = dma.done.wait [#allocation3], 512  }
   0xe   :  { %496 = vsyncadd [#allocation3], 4294966784 }
   0xf   :  { %497 = dma.done.wait [#allocation6], 3072  }
  0x10   :  { %498 = vsyncadd [#allocation6], 4294964224  ;;  %v160_v0 = vld [vmem:[#allocation5 + $0x38] sm:$0xff]  ;;  %v159_v1 = vld [vmem:[#allocation5 + $0x30] sm:$0xff]  ;;  %vm96_vm0 = vcmask 523264   ;;  %vm173_vm1 = vcmask 1041409  }
  0x11   :  { %197 = vmatpush.msra.mxu0 %v160_v0  ;;  %v158_v2 = vld [vmem:[#allocation5 + $0x28] sm:$0xff]  ;;  %v339_v3 = vld [vmem:[#allocation2] sm:$0xff]   ;;  %v355_v7 = vld [vmem:[#allocation2 + $0x10] sm:$0xff]   ;;  %vm175_vm2 = vcmask 1042434   ;;  %vm177_vm3 = vcmask 1043459   ;;  %vm179_vm4 = vcmask 1044484  }
  0x12   :  { %v340_v4 = vunpack.c.l.bf16 %v339_v3  ;;  %v341_v5 = vunpack.c.h.bf16 %v339_v3  ;;  %v354_v6 = vld [vmem:[#allocation2 + $0x8] sm:$0xff]   ;;  %v356_v8 = vld [vmem:[#allocation2 + $0x18] sm:$0xff]   ;;  %v157_v9 = vld [vmem:[#allocation5 + $0x20] sm:$0xff]  ;;  %v348_v12 = vunpack.c.l.bf16 %v355_v7  ;;  %v349_v13 = vunpack.c.h.bf16 %v355_v7  ;;  %s512_s23 = smov [#allocation8]   ;;  %s319_s28 = sshll.u32 %s600_s7, 4  ;;  %s320_s28 = int_to_ptr.hbm [resolvable:$true] %s319_s28 }
  0x13   :  { %198 = vmatpush.msra.mxu0 %v159_v1  ;;  %v344_v10 = vunpack.c.l.bf16 %v354_v6  ;;  %v345_v11 = vunpack.c.h.bf16 %v354_v6  ;;  %v225_v14 = vld [vmem:[#allocation7 + $0x78] sm:$0xff]  ;;  %v224_v15 = vld [vmem:[#allocation7 + $0x70] sm:$0xff]  ;;  %v352_v16 = vunpack.c.l.bf16 %v356_v8  ;;  %v353_v17 = vunpack.c.h.bf16 %v356_v8  ;;  %v223_v25 = vld [vmem:[#allocation7 + $0x68] sm:$0xff]  ;;  %s306_s24 = sshll.u32 %s512_s23, 4  ;;  %s307_s24 = int_to_ptr.vmem [resolvable:$true] %s306_s24 }
  0x14   :  { %v97_v18 = vsel %vm96_vm0, %v340_v4, 0.0  ;;  %v104_v19 = vsel %vm96_vm0, %v341_v5, 0.0  ;;  %230 = vmatpush.msra.mxu1 %v225_v14  ;;  %v156_v20 = vld [vmem:[#allocation5 + $0x18] sm:$0xff]  ;;  %v125_v28 = vsel %vm96_vm0, %v348_v12, 0.0  ;;  %v132_v29 = vsel %vm96_vm0, %v349_v13, 0.0  ;;  %v155_v30 = vld [vmem:[#allocation5 + $0x10] sm:$0xff] }
  0x15   :  { %199 = vmatpush.msra.mxu0 %v158_v2  ;;  %v98_v21 = vrot.slane %v97_v18, 4  ;;  %v105_v22 = vrot.slane %v104_v19, 4  ;;  %v111_v23 = vsel %vm96_vm0, %v344_v10, 0.0  ;;  %v118_v24 = vsel %vm96_vm0, %v345_v11, 0.0  ;;  %v222_v35 = vld [vmem:[#allocation7 + $0x60] sm:$0xff]  ;;  %v154_v40 = vld [vmem:[#allocation5 + $0x8] sm:$0xff] }
  0x16   :  { %v112_v26 = vrot.slane %v111_v23, 4  ;;  %v119_v27 = vrot.slane %v118_v24, 4  ;;  %231 = vmatpush.msra.mxu1 %v224_v15  ;;  %v126_v33 = vrot.slane %v125_v28, 4  ;;  %v133_v34 = vrot.slane %v132_v29, 4  ;;  %v221_v49 = vld [vmem:[#allocation7 + $0x58] sm:$0xff]  ;;  %v153_v50 = vld [vmem:[#allocation5] sm:$0xff] }
  0x17   :  { %200 = vmatpush.msra.mxu0 %v157_v9  ;;  %v99_v31 = vadd.f32 %v98_v21, %v97_v18  ;;  %v106_v32 = vadd.f32 %v105_v22, %v104_v19  ;;  %v139_v38 = vsel %vm96_vm0, %v352_v16, 0.0  ;;  %v146_v39 = vsel %vm96_vm0, %v353_v17, 0.0  ;;  %v220_v59 = vld [vmem:[#allocation7 + $0x50] sm:$0xff]  ;;  %v219_v4 = vld [vmem:[#allocation7 + $0x48] sm:$0xff]  ;;  %v218_v13 = vld [vmem:[#allocation7 + $0x40] sm:$0xff] }
  0x18   :  { %v113_v36 = vadd.f32 %v112_v26, %v111_v23  ;;  %v120_v37 = vadd.f32 %v119_v27, %v118_v24  ;;  %232 = vmatpush.msra.mxu1 %v223_v25  ;;  %v127_v43 = vadd.f32 %v126_v33, %v125_v28  ;;  %v134_v44 = vadd.f32 %v133_v34, %v132_v29  ;;  %v216_v25 = vld [vmem:[#allocation7 + $0x30] sm:$0xff]  ;;  %v215_v28 = vld [vmem:[#allocation7 + $0x28] sm:$0xff]  ;;  %v210_v34 = vld [vmem:[#allocation7] sm:$0xff] }
  0x19   :  { %201 = vmatpush.msra.mxu0 %v156_v20  ;;  %v100_v41 = vrot.slane %v99_v31, 2  ;;  %v107_v42 = vrot.slane %v106_v32, 2  ;;  %v140_v47 = vrot.slane %v139_v38, 4  ;;  %v147_v48 = vrot.slane %v146_v39, 4  ;;  %v217_v20 = vld [vmem:[#allocation7 + $0x38] sm:$0xff]  ;;  %v211_v33 = vld [vmem:[#allocation7 + $0x8] sm:$0xff] }
  0x1a   :  { %v114_v45 = vrot.slane %v113_v36, 2  ;;  %v121_v46 = vrot.slane %v120_v37, 2  ;;  %233 = vmatpush.msra.mxu1 %v222_v35  ;;  %v128_v53 = vrot.slane %v127_v43, 2  ;;  %v135_v54 = vrot.slane %v134_v44, 2  ;;  %v369_v35 = vld [vmem:[%s595_s2] ss:$0 sm:$0xff] }
  0x1b   :  { %202 = vmatpush.msra.mxu0 %v155_v30  ;;  %v101_v51 = vadd.f32 %v100_v41, %v99_v31  ;;  %v108_v52 = vadd.f32 %v107_v42, %v106_v32  ;;  %v141_v57 = vadd.f32 %v140_v47, %v139_v38  ;;  %v148_v58 = vadd.f32 %v147_v48, %v146_v39  ;;  %v214_v30 = vld [vmem:[#allocation7 + $0x20] sm:$0xff]  ;;  %v213_v31 = vld [vmem:[#allocation7 + $0x18] sm:$0xff]  ;;  %v212_v32 = vld [vmem:[#allocation7 + $0x10] sm:$0xff] }
  0x1c   :  { %v115_v55 = vadd.f32 %v114_v45, %v113_v36  ;;  %v122_v56 = vadd.f32 %v121_v46, %v120_v37  ;;  %v129_v62 = vadd.f32 %v128_v53, %v127_v43  ;;  %v136_v63 = vadd.f32 %v135_v54, %v134_v44  ;;  %234 = vmatpush.msra.mxu1 %v221_v49  ;;  %v370_v42 = vld [vmem:[%s597_s4] ss:$0 sm:$0xff] }
  0x1d   :  { %203 = vmatpush.msra.mxu0 %v154_v40  ;;  %v102_v60 = vrot.slane %v101_v51, 1  ;;  %v109_v61 = vrot.slane %v108_v52, 1  ;;  %v142_v2 = vrot.slane %v141_v57, 2  ;;  %v149_v3 = vrot.slane %v148_v58, 2  ;;  %v265_v46 = vld [vmem:[%s598_s5] sm:$0xff]  ;;  %s308_s5 = sshll.u32 %s599_s6, 4  ;;  %s309_s5 = int_to_ptr.hbm [resolvable:$true] %s308_s5 }
  0x1e   :  { %v116_v0 = vrot.slane %v115_v55, 1  ;;  %v123_v1 = vrot.slane %v122_v56, 1  ;;  %v130_v7 = vrot.slane %v129_v62, 1  ;;  %v137_v8 = vrot.slane %v136_v63, 1  ;;  %235 = vmatpush.msra.mxu1 %v220_v59  ;;  %s513_s6 = smov [#allocation9]  }
  0x1f   :  { %204 = vmatpush.msra.mxu0 %v153_v50  ;;  %v103_v5 = vadd.f32 %v102_v60, %v101_v51  ;;  %v110_v6 = vadd.f32 %v109_v61, %v108_v52  ;;  %v143_v11 = vadd.f32 %v142_v2, %v141_v57  ;;  %v150_v12 = vadd.f32 %v149_v3, %v148_v58  ;;  %s317_s25 = sshll.u32 %s513_s6, 4  ;;  %s318_s25 = int_to_ptr.vmem [resolvable:$true] %s317_s25 }
  0x20   :  { %v117_v9 = vadd.f32 %v116_v0, %v115_v55  ;;  %v124_v10 = vadd.f32 %v123_v1, %v122_v56  ;;  %v131_v14 = vadd.f32 %v130_v7, %v129_v62  ;;  %v138_v15 = vadd.f32 %v137_v8, %v136_v63  ;;  %236 = vmatpush.msra.mxu1 %v219_v4 }
  0x21   :  { %v174_v16 = vsel %vm173_vm1, %v110_v6, %v103_v5  ;;  %v144_v17 = vrot.slane %v143_v11, 1  ;;  %v151_v18 = vrot.slane %v150_v12, 1  ;;  %vm181_vm5 = vcmask 1045509  }
  0x22   :  { %v176_v19 = vsel %vm175_vm2, %v117_v9, %v174_v16  ;;  %vm183_vm6 = vcmask 1046534   ;;  %237 = vmatpush.msra.mxu1 %v218_v13  ;;  %vm185_vm7 = vcmask 1047559   ;;  %v510_v39 = vmov 0  }
  0x23   :  { %v178_v21 = vsel %vm177_vm3, %v124_v10, %v176_v19  ;;  %v145_v22 = vadd.f32 %v144_v17, %v143_v11  ;;  %v152_v23 = vadd.f32 %v151_v18, %v150_v12  ;;  %368 = vset.pattern.permute.xlu0 %v510_v39  ;;  %v251_v40 = vlaneseq }
  0x24   :  { %v180_v24 = vsel %vm179_vm4, %v131_v14, %v178_v21  ;;  %238 = vmatpush.msra.mxu1 %v217_v20  ;;  %vm78_vm9 = vcmask 0   ;;  %v511_v47 = vmov 0.0  }
  0x25   :  { %v182_v26 = vsel %vm181_vm5, %v138_v15, %v180_v24  ;;  %v252_v41 = vand.u32 127, %v251_v40  ;;  %79 = vst.msk [vmem:[#allocation9] sm:$0x1] %vm78_vm9, %v511_v47  ;;  %v278_v56 = vshrl.u32 %v251_v40, 7 }
  0x26   :  { %v184_v27 = vsel %vm183_vm6, %v145_v22, %v182_v26  ;;  %239 = vmatpush.msra.mxu1 %v216_v25 }
  0x27   :  { %v186_v29 = vsel %vm185_vm7, %v152_v23, %v184_v27  ;;  %vm253_vm8 = vcmp.lt.s32.totalorder %v252_v41, 2  ;;  %vm281_vm11 = vcmp.lt.s32.totalorder %v278_v56, 2 }
  0x28   :  { %335 = vmatmul.msk.f32.vlgmr.msra.gmra.mxu0 %vm96_vm0, %v186_v29  ;;  %240 = vmatpush.msra.mxu1 %v215_v28  ;;  %v337_v60 = vsel %vm281_vm11, 1.0, %v511_v47 }
  0x2a   :  { %241 = vmatpush.msra.mxu1 %v214_v30 }
  0x2c   :  { %242 = vmatpush.msra.mxu1 %v213_v31  ;;  %v284_v5 = vld [vmem:[#allocation9] sm:$0x1] }
  0x2e   :  { %243 = vmatpush.msra.mxu1 %v212_v32 }
  0x30   :  { %244 = vmatpush.msra.mxu1 %v211_v33 }
  0x32   :  { %245 = vmatpush.msra.mxu1 %v210_v34 }
  0xa5   :  { %v206_v36 = vpop.f32.mrf.mxu0 }
  0xa6   :  { %v207_v37 = vadd.f32 %v369_v35, %v206_v36 }
  0xa8   :  { %v209_v38 = vmax.f32 %v207_v37, 0.0 }
  0xaa   :  { %246 = vmatmul.f32.vlgmr.msra.gmra.mxu1 %v209_v38 }
 0x127   :  { %v247_v43 = vpop.f32.mrf.mxu1 }
 0x128   :  { %v248_v44 = vadd.f32 %v370_v42, %v247_v43 }
 0x12a   :  { %250 = vst [vmem:[#allocation8] sm:$0xff] %v248_v44  ;;  %v254_v45 = vsel %vm253_vm8, %v248_v44, -1e+30 }
 0x12b   :  { %255 = vmax.xlane.f32.xlu0 %v254_v45  ;;  %311 = dma.vmem_to_hbm [thread:$0]  %s307_s24, 128, %s309_s5, [#allocation4]  }
 0x13f   :  { %267 = vperm.xlu0 %368, %v265_v46  }
 0x19e   :  { %v256_v48 = vpop.xlane.xlu0 %255 }
 0x19f   :  { %v257_v49 = vsub.f32 %v254_v45, %v256_v48 }
 0x1a1   :  { %v258_v50 = vmul.f32 1.442695, %v257_v49 }
 0x1a3   :  { %371 = vpow2.f32 %v258_v50 }
 0x1a9   :  { %v372_v51 = vpop.eup %371 }
 0x1aa   :  { %260 = vadd.xlane.f32.xlu1 %v372_v51 }
 0x1b1   :  { %v268_v52 = vpop.permute.xlu0 %267 }
 0x1b2   :  { %vm269_vm10 = vcmp.eq.s32.totalorder %v252_v41, %v268_v52 }
 0x1b3   :  { %v336_v53 = vsel %vm269_vm10, 1.0, %v511_v47 }
 0x1b4   :  { %v272_v54 = vmul.f32 %v336_v53, %v248_v44 }
 0x1b6   :  { %273 = vadd.xlane.f32.xlu1 %v272_v54 }
 0x21d   :  { %v261_v55 = vpop.xlane.xlu1 %260 }
 0x21e   :  { %373 = vlog2.f32 %v261_v55 }
 0x224   :  { %v374_v57 = vpop.eup %373 }
 0x225   :  { %v263_v58 = vmul.f32 0.6931472, %v374_v57 }
 0x227   :  { %v264_v59 = vadd.f32 %v263_v58, %v256_v48 }
 0x229   :  { %v274_v61 = vpop.xlane.xlu1 %273 }
 0x22a   :  { %v275_v62 = vsub.f32 %v264_v59, %v274_v61 }
 0x22c   :  { %v285_v63 = vmul.f32 %v337_v60, %v275_v62 }
 0x22e   :  { %v286_v0 = vrot.slane %v285_v63, 4 }
 0x230   :  { %v287_v1 = vadd.f32 %v286_v0, %v285_v63 }
 0x232   :  { %v288_v2 = vrot.slane %v287_v1, 2 }
 0x234   :  { %v289_v3 = vadd.f32 %v288_v2, %v287_v1 }
 0x236   :  { %v290_v4 = vrot.slane %v289_v3, 1 }
 0x238   :  { %v291_v6 = vadd.f32 %v290_v4, %v289_v3 }
 0x23a   :  { %v292_v7 = vadd.f32 %v291_v6, %v284_v5 }
 0x23c   :  { %294 = vst.msk [vmem:[#allocation9] sm:$0x1] %vm78_vm9, %v292_v7 }
 0x243   :  { %v298_v8 = vld [vmem:[#allocation9] sm:$0x1] }
 0x244   :  { %v299_v9 = vmul.f32 0.5, %v298_v8 }
 0x246   :  { %300 = vst.msk [vmem:[#allocation9] sm:$0x1] %vm78_vm9, %v299_v9 }
 0x247   :  { %322 = dma.vmem_to_hbm [thread:$0]  %s318_s25, 16, %s320_s28, [#allocation10]  }
 0x248   :  { %499 = dma.done.wait [#allocation4], 128  }
 0x249   :  { %500 = vsyncadd [#allocation4], 4294967168 }
 0x24a   :  { %501 = dma.done.wait [#allocation10], 16  }
 0x24b   :  { %502 = vsyncadd [#allocation10], 4294967280 }
 0x24c   :  { %331 = vsyncpa [#allocation3], 1 }
 0x24d   :  { %332 = vsyncpa [#allocation6], 1 }
 0x24e   :  { %333 = vsyncpa [#allocation4], 1 }
 0x24f   :  { %334 = vsyncpa [#allocation10], 1 }

</bundles_post_ra>
